<compile_context>
chip_gen: v7x
topology: tpu7x:2x2x1
jax: 0.10.0
libtpu: 0.0.40
codegen_flags: <defaults>
</compile_context>

<pallas_src>
import math

import jax
import jax.numpy as jnp
from jax.experimental import pallas as pl
from jax.experimental.pallas import tpu as pltpu


def _regularize_kernel(x_ref, s_ref, v_ref, o_ref):
    """out = x + s * v, one FMA per vreg.

    x_ref : VMEM (R, HWp)   row block of the input
    s_ref : VMEM (R, 1)     fused per-row scalar: noise[b] * conv_w[c]
    v_ref : VMEM (1, HWp)   resident flattened spatial vector
    o_ref : VMEM (R, HWp)   output row block
    """
    x = x_ref[...].astype(jnp.float32)
    o_ref[...] = (x + s_ref[...] * v_ref[...]).astype(o_ref.dtype)


def _round_up(n, m):
    return ((n + m - 1) // m) * m


def regularize_block(x_nchw, conv_w, vector, noise):
    """Forward of Regularize_block.

    x_nchw : (B, C, H, W)
    conv_w : (C, 1, 1, 1)  weights of Conv2d(1, C, kernel_size=1, bias=False)
    vector : (1, 1, H, W)  learned spatial vector
    noise  : (B,)          per-sample MCMC weight (already noise*sigma + miu)
    """
    B, C, H, W = x_nchw.shape
    HW = H * W
    BC = B * C
    out_dtype = x_nchw.dtype
    elem_bytes = jnp.dtype(out_dtype).itemsize

    # ---- lane-dense 2-D layout: rows = (b,c) pairs, lanes = padded spatial ----
    HWp = _round_up(HW, 128)                    # lane dim must be a multiple of 128
    x2 = x_nchw.reshape(BC, HW)                 # keep the caller's dtype (no forced f32 upcast)

    # Fused per-row scalar: s[b*C + c] = noise[b] * conv_w[c]  (algebraically identical)
    s = (noise.reshape(B, 1).astype(jnp.float32)
         * conv_w.reshape(1, C).astype(jnp.float32)).reshape(BC, 1)
    v = vector.reshape(1, HW).astype(jnp.float32)

    # ---- row-block size: target ~4 MiB input tiles, multiple of 8 rows ----
    target_tile_bytes = 4 * 1024 * 1024
    r_max = max(8, (target_tile_bytes // (HWp * 4)) // 8 * 8)
    n_blocks = max(1, pl.cdiv(BC, r_max))
    R = _round_up(pl.cdiv(BC, n_blocks), 8)     # minimize row padding while staying <= ~4 MiB
    BCp = _round_up(BC, R)

    # Zero-pad lanes / rows up to the block grid (padding is sliced off afterwards).
    if HWp != HW:
        x2 = jnp.pad(x2, ((0, 0), (0, HWp - HW)))
        v = jnp.pad(v, ((0, 0), (0, HWp - HW)))
    if BCp != BC:
        x2 = jnp.pad(x2, ((0, BCp - BC), (0, 0)))
        s = jnp.pad(s, ((0, BCp - BC), (0, 0)))

    grid = (BCp // R,)

    # Explicit VMEM budget: double-buffered in + out tiles plus tiny params, with headroom.
    tile_bytes = R * HWp * max(elem_bytes, 4)
    vmem_limit = max(4 * tile_bytes + 4 * HWp * 4 + 4 * R * 4 + (1 << 20),
                     8 * 1024 * 1024)

    cost = pl.CostEstimate(
        flops=2 * BC * HW,
        transcendentals=0,
        bytes_accessed=2 * BC * HW * elem_bytes + BC * 4 + HW * 4,
    )

    out2 = pl.pallas_call(
        _regularize_kernel,
        out_shape=jax.ShapeDtypeStruct((BCp, HWp), out_dtype),
        grid=grid,
        in_specs=[
            pl.BlockSpec((R, HWp), lambda i: (i, 0)),   # x row block
            pl.BlockSpec((R, 1), lambda i: (i, 0)),     # fused per-row scale column
            pl.BlockSpec((1, HWp), lambda i: (0, 0)),   # resident spatial vector
        ],
        out_specs=pl.BlockSpec((R, HWp), lambda i: (i, 0)),
        compiler_params=pltpu.CompilerParams(
            dimension_semantics=("parallel",),
            vmem_limit_bytes=int(vmem_limit),
        ),
        cost_estimate=cost,
    )(x2, s, v)

    out2 = out2[:BC, :HW]
    return out2.reshape(B, C, H, W)


if __name__ == "__main__":
    B, C, H, W = 2, 4, 16, 16
    key = jax.random.PRNGKey(0)
    k_vec, k_conv, k_x, k_noise = jax.random.split(key, 4)

    # nn.init.kaiming_normal_ on (1,1,H,W): fan_in = 1*H*W, gain = sqrt(2)
    vec_std = math.sqrt(2.0 / (H * W))
    vector = jax.random.normal(k_vec, (1, 1, H, W), jnp.float32) * vec_std
    # Conv2d(1, C, kernel_size=1, bias=False) weight: (C, 1, 1, 1)
    conv_w = jax.random.normal(k_conv, (C, 1, 1, 1), jnp.float32)

    # norm_weight_miu = 0, norm_weight_sigma = 1 (as in __init__)
    miu = jnp.float32(0.0)
    sigma = jnp.float32(1.0)

    x = jax.random.normal(k_x, (B, C, H, W), jnp.float32)
    # Generate_noisy_weight: per-sample standard normal, scaled by sigma, shifted by miu.
    g_noise = jax.random.normal(k_noise, (B,), jnp.float32)
    mcmc_weight = g_noise * sigma + miu
    # TODO(synk): Uniform_noise branch (disabled by default in __init__) not implemented.

    out = regularize_block(x, conv_w, vector, mcmc_weight)
    out = jax.block_until_ready(out)

    # Pure-JAX reference check
    expand_vector = conv_w.reshape(C, 1, 1) * vector.reshape(1, H, W)          # (C,H,W)
    ref = x + expand_vector[None] * mcmc_weight[:, None, None, None]           # (B,C,H,W)
    assert out.shape == (B, C, H, W)
    assert out.dtype == x.dtype
    assert jnp.allclose(out, ref, atol=1e-5, rtol=1e-5), "mismatch vs reference"

    print("KERNEL_OK")
</pallas_src>

<mosaic_0001>
module attributes {stable_mosaic.version = 11 : i64} {
  func.func @_regularize_kernel(%arg0: i32, %arg1: memref<8x256xf32, #tpu.memory_space<vmem>>, %arg2: memref<8x1xf32, #tpu.memory_space<vmem>>, %arg3: memref<1x256xf32, #tpu.memory_space<vmem>>, %arg4: memref<8x256xf32, #tpu.memory_space<vmem>>) attributes {dimension_semantics = [#tpu.dimension_semantics<parallel>], iteration_bounds = array<i64: 1>, scalar_prefetch = 0 : i64, scratch_operands = 0 : i64, tpu.core_type = #tpu.core_type<tc>, window_params = [{transform_indices = @transform_0, window_bounds = array<i64: 8, 256>}, {transform_indices = @transform_1, window_bounds = array<i64: 8, 1>}, {pipeline_mode = #tpu.pipeline_mode<synchronous>, transform_indices = @transform_2, window_bounds = array<i64: 1, 256>}, {transform_indices = @transform_3, window_bounds = array<i64: 8, 256>}]} {
    %c0 = arith.constant 0 : index
    %c0_0 = arith.constant 0 : index
    %0 = vector.load %arg1[%c0, %c0_0] : memref<8x256xf32, #tpu.memory_space<vmem>>, vector<8x256xf32>
    %c0_1 = arith.constant 0 : index
    %c0_2 = arith.constant 0 : index
    %1 = vector.load %arg2[%c0_1, %c0_2] : memref<8x1xf32, #tpu.memory_space<vmem>>, vector<8x1xf32>
    %c0_3 = arith.constant 0 : index
    %c0_4 = arith.constant 0 : index
    %2 = vector.load %arg3[%c0_3, %c0_4] : memref<1x256xf32, #tpu.memory_space<vmem>>, vector<1x256xf32>
    %3 = vector.broadcast %1 : vector<8x1xf32> to vector<8x256xf32>
    %4 = vector.broadcast %2 : vector<1x256xf32> to vector<8x256xf32>
    %5 = arith.mulf %3, %4 : vector<8x256xf32>
    %6 = arith.addf %0, %5 : vector<8x256xf32>
    %c0_5 = arith.constant 0 : index
    %c0_6 = arith.constant 0 : index
    %7 = vector.load %arg4[%c0_5, %c0_6] : memref<8x256xf32, #tpu.memory_space<vmem>>, vector<8x256xf32>
    tpu.vector_store %arg4[%c0_5, %c0_6], %6 {strides = array<i32>} : memref<8x256xf32, #tpu.memory_space<vmem>>, vector<8x256xf32>,
    return
  }
  func.func @transform_0(%arg0: i32) -> (i32, i32) {
    %c0_i32 = arith.constant 0 : i32
    %c0_i32_0 = arith.constant 0 : i32
    return %arg0, %c0_i32 : i32, i32
  }
  func.func @transform_1(%arg0: i32) -> (i32, i32) {
    %c0_i32 = arith.constant 0 : i32
    %c0_i32_0 = arith.constant 0 : i32
    return %arg0, %c0_i32 : i32, i32
  }
  func.func @transform_2(%arg0: i32) -> (i32, i32) {
    %c0_i32 = arith.constant 0 : i32
    %c0_i32_0 = arith.constant 0 : i32
    %c0_i32_1 = arith.constant 0 : i32
    return %c0_i32, %c0_i32_0 : i32, i32
  }
  func.func @transform_3(%arg0: i32) -> (i32, i32) {
    %c0_i32 = arith.constant 0 : i32
    %c0_i32_0 = arith.constant 0 : i32
    return %arg0, %c0_i32 : i32, i32
  }
}

</mosaic_0001>

<bundles_post_ra>
// kernel: tpu_custom_call.1
= control target key start
LH: loop header
LB: loop body
LE: loop exit
PB: predicated region body
PF: predicated region fallthrough
CT: control target
= control target key end

     0   :  { %8 = vsyncpa [#allocation3], 0  ;;  %s173_s0 = inlined_call_operand.hbm [shape: f32[8,256], index: 0, kind: input, shape index: {}]   ;;  %s174_s1 = inlined_call_operand.vmem [shape: f32[8,1], index: 1, kind: input, shape index: {}]   ;;  %s175_s2 = inlined_call_operand.vmem [shape: f32[1,256], index: 2, kind: input, shape index: {}]   ;;  %s176_s3 = inlined_call_operand.hbm [shape: f32[8,256], index: 3, kind: output, shape index: {}]  }
   0x1   :  { %9 = vsyncpa [#allocation4], 0  ;;  %s120_s12 = smov [#allocation2]   ;;  %s72_s16 = scalar_lea.hbm %s173_s0, 256 }
   0x2   :  { %s16_s13 = sshll.u32 %s120_s12, 4  ;;  %p73_p0 = scmp.ne.s32.totalorder %s173_s0, %s72_s16  ;;  %s17_s13 = int_to_ptr.vmem [resolvable:$true] %s16_s13 }
   0x3   :  { %p76_p1 = scmp.lt.u32.totalorder %s72_s16, %s173_s0 }
   0x5   :  { %p78_p2 = pnand %p76_p1, %p73_p0 }
   0x7   :  { %81 = shalt.err (!%p78_p2)
}
   0x8   :  { %s82_s21 = scalar_lea.vmem %s17_s13, 256  ;;  %p87_p4 = scmp.lt.s32.totalorder %s17_s13, %s17_s13 }
   0x9   :  { %p83_p3 = scmp.ne.s32.totalorder %s17_s13, %s82_s21  ;;  %p88_p5 = scmp.lt.s32.totalorder %s82_s21, %s82_s21 }
   0xb   :  { %p89_p6 = por %p88_p5, %p87_p4 }
   0xd   :  { %p90_p7 = pnand %p89_p6, %p83_p3 }
   0xf   :  { %93 = shalt.err (!%p90_p7)
}
  0x10   :  { %19 = dma.hbm_to_vmem [thread:$0]  %s173_s0, 256, %s17_s13, [#allocation3]  }
  0x11   :  { %116 = dma.done.wait [#allocation3], 256  }
  0x12   :  { %117 = vsyncadd [#allocation3], 4294967040  ;;  %v121_v0 = vmov 0   ;;  %v29_v1 = vld [vmem:[%s174_s1] sm:$0xff]  ;;  %v37_v2 = vlaneseq  ;;  %v28_v11 = vld [vmem:[#allocation2 + $0x8] sm:$0xff]  ;;  %s122_s0 = smov [#allocation5]  }
  0x13   :  { %71 = vset.pattern.permute.xlu0 %v121_v0  ;;  %v30_v6 = vld [vmem:[%s175_s2] sm:$0x3]  ;;  %s59_s28 = sshll.u32 %s122_s0, 4  ;;  %s60_s28 = int_to_ptr.vmem [resolvable:$true] %s59_s28 }
  0x14   :  { %33 = vperm.xlu0 %71, %v29_v1   ;;  %v38_v3 = vshrl.u32 %v37_v2, 7  ;;  %v27_v10 = vld [vmem:[#allocation2] sm:$0xff]  ;;  %s94_s1 = scalar_lea.vmem %s60_s28, 256  ;;  %p99_p9 = scmp.lt.s32.totalorder %s60_s28, %s60_s28 }
  0x15   :  { %p95_p8 = scmp.ne.s32.totalorder %s60_s28, %s94_s1  ;;  %p100_p10 = scmp.lt.s32.totalorder %s94_s1, %s94_s1 }
  0x16   :  { %v39_v4 = vsub.s32 0, %v38_v3  ;;  %v43_v5 = vsub.s32 1, %v38_v3 }
  0x17   :  { %p101_p11 = por %p100_p10, %p99_p9 }
  0x18   :  { %v40_v7 = vrot.slane %v30_v6, %v39_v4  ;;  %v44_v8 = vrot.slane %v30_v6, %v43_v5 }
  0x19   :  { %p102_p12 = pnand %p101_p11, %p95_p8 }
  0x93   :  { %v34_v9 = vpop.permute.xlu0 %33 }
  0x94   :  { %v47_v12 = vmul.f32 %v40_v7, %v34_v9  ;;  %v48_v13 = vmul.f32 %v44_v8, %v34_v9 }
  0x96   :  { %v49_v14 = vadd.f32 %v47_v12, %v27_v10  ;;  %v50_v15 = vadd.f32 %v48_v13, %v28_v11 }
  0x98   :  { %51 = vst [vmem:[#allocation5] sm:$0xff] %v49_v14  ;;  %52 = vst [vmem:[#allocation5 + $0x8] sm:$0xff] %v50_v15 }
  0x99   :  { %105 = shalt.err (!%p102_p12)
}
  0x9a   :  { %s106_s30 = scalar_lea.hbm %s176_s3, 256 }
  0x9b   :  { %p107_p13 = scmp.ne.s32.totalorder %s176_s3, %s106_s30  ;;  %p110_p0 = scmp.lt.u32.totalorder %s106_s30, %s176_s3 }
  0x9d   :  { %p112_p1 = pnand %p110_p0, %p107_p13 }
  0x9f   :  { %115 = shalt.err (!%p112_p1)
}
  0xa0   :  { %62 = dma.vmem_to_hbm [thread:$0]  %s60_s28, 256, %s176_s3, [#allocation4]  }
  0xa1   :  { %118 = dma.done.wait [#allocation4], 256  }
  0xa2   :  { %119 = vsyncadd [#allocation4], 4294967040 }
  0xa3   :  { %66 = vsyncpa [#allocation3], 1 }
  0xa4   :  { %67 = vsyncpa [#allocation4], 1 }

</bundles_post_ra>
